<compile_context>
chip_gen: v7x
topology: tpu7x:2x2x1
jax: 0.10.0
libtpu: 0.0.40
codegen_flags: <defaults>
</compile_context>

<pallas_src>
import jax
import jax.numpy as jnp
from jax.experimental import pallas as pl
from jax.experimental.pallas import tpu as pltpu

LANE = 128  # value output padded to a full lane width for dense stores


# ----------------------------- Pallas kernel ------------------------------ #
def critic_rnn_kernel(
    x_ref,              # (1, B, D)   per-timestep critic input block
    h0_ref,             # (B, H)      initial hidden state (resident)
    w1_ref, b1_ref,     # (D, H), (1, H)     fc1 (pre-transposed)
    wih_ref, bih_ref,   # (H, 3H), (1, 3H)   GRU input->gates, cols = [r|z|n]
    whh_ref, bhh_ref,   # (H, 3H), (1, 3H)   GRU hidden->gates, cols = [r|z|n]
    w2_ref,             # (1, H)             fc2 weight row
    b2_ref,             # (1, 1) in SMEM     fc2 bias scalar
    value_ref,          # (1, B, LANE)       per-step value (col 0 is real)
    h_out_ref,          # (B, H)             hidden-state carry / final hidden
):
    t = pl.program_id(0)
    H = h_out_ref.shape[1]

    # Initialize the carried hidden state on the first timestep.
    @pl.when(t == 0)
    def _():
        h_out_ref[...] = h0_ref[...]

    x = x_ref[0]            # (B, D)
    h = h_out_ref[...]      # (B, H), carried across grid steps (constant block)

    # fc1 + ReLU
    a = jnp.dot(x, w1_ref[...], preferred_element_type=jnp.float32) + b1_ref[...]
    a = jnp.maximum(a, 0.0)

    # Fused GRU gate matmuls: one (B, 3H) result per path instead of 3 each.
    gi = jnp.dot(a, wih_ref[...], preferred_element_type=jnp.float32) + bih_ref[...]
    gh = jnp.dot(h, whh_ref[...], preferred_element_type=jnp.float32) + bhh_ref[...]

    r = jax.nn.sigmoid(gi[:, 0:H] + gh[:, 0:H])
    z = jax.nn.sigmoid(gi[:, H:2 * H] + gh[:, H:2 * H])
    n = jnp.tanh(gi[:, 2 * H:3 * H] + r * gh[:, 2 * H:3 * H])
    h_new = (1.0 - z) * n + z * h

    # fc2 (output width 1): VPU multiply + lane reduce, no 1-wide MXU matmul.
    value = jnp.sum(h_new * w2_ref[...], axis=-1, keepdims=True) + b2_ref[0, 0]

    # Lane-dense store of the value (real result lives in column 0).
    value_ref[0] = jnp.broadcast_to(value, (value.shape[0], LANE))

    # Carry the hidden state to the next timestep / final output.
    h_out_ref[...] = h_new


# ------------------------------ JAX wrapper ------------------------------- #
def critic_rnn_forward(x_seq, h0, p):
    """x_seq: (T, B, D) sequence of critic inputs; h0: (B, H) initial hidden.

    Returns (values (T, B, 1), h_final (B, H)) — equivalent to calling the
    PyTorch module once per timestep with persistent rnn_hidden.
    """
    T, B, D = x_seq.shape
    H = h0.shape[1]

    def const(shape):
        return pl.BlockSpec(shape, lambda t, _s=shape: (0,) * len(_s))

    in_specs = [
        pl.BlockSpec((1, B, D), lambda t: (t, 0, 0)),          # x_seq (per step)
        const((B, H)),                                          # h0
        const((D, H)), const((1, H)),                           # fc1
        const((H, 3 * H)), const((1, 3 * H)),                   # GRU input path
        const((H, 3 * H)), const((1, 3 * H)),                   # GRU hidden path
        const((1, H)),                                          # fc2 weight row
        pl.BlockSpec(memory_space=pltpu.MemorySpace.SMEM),      # fc2 bias scalar
    ]
    out_specs = (
        pl.BlockSpec((1, B, LANE), lambda t: (t, 0, 0)),        # value (padded)
        const((B, H)),                                          # hidden carry
    )

    value_pad, h_out = pl.pallas_call(
        critic_rnn_kernel,
        grid=(T,),
        in_specs=in_specs,
        out_specs=out_specs,
        out_shape=(
            jax.ShapeDtypeStruct((T, B, LANE), jnp.float32),
            jax.ShapeDtypeStruct((B, H), jnp.float32),
        ),
        compiler_params=pltpu.CompilerParams(
            dimension_semantics=("arbitrary",),  # sequential: h carries over t
        ),
    )(
        x_seq, h0,
        p["w1"], p["b1"],
        p["w_ih"], p["b_ih"],
        p["w_hh"], p["b_hh"],
        p["w2"], p["b2"],
    )
    values = value_pad[:, :, :1]  # strip lane padding -> (T, B, 1)
    return values, h_out


# --------------------- deterministic parameter init ----------------------- #
def orthogonal(key, shape, gain=1.0):
    """Mirror of torch.nn.init.orthogonal_ for a 2-D weight of `shape`."""
    rows, cols = shape
    n, m = max(rows, cols), min(rows, cols)
    a = jax.random.normal(key, (n, m), dtype=jnp.float32)
    q, r = jnp.linalg.qr(a)
    q = q * jnp.sign(jnp.diag(r))[None, :]
    if rows < cols:
        q = q.T
    return (gain * q[:rows, :cols]).astype(jnp.float32)


def make_params(key, critic_input_dim, rnn_hidden_dim):
    D, H = critic_input_dim, rnn_hidden_dim
    k1, k2, k3, k4 = jax.random.split(key, 4)

    # fc1: PyTorch weight (H, D) -> stored transposed (D, H)
    w1 = orthogonal(k1, (H, D)).T
    b1 = jnp.zeros((1, H), jnp.float32)

    # GRUCell: weight_ih / weight_hh are (3H, H) with rows stacked as [r|z|n];
    # orthogonal over the full stacked matrix (as PyTorch orthogonal_init does),
    # then transposed to (H, 3H) so columns are [r|z|n] and a single matmul
    # produces all gates.
    w_ih = orthogonal(k2, (3 * H, H)).T
    w_hh = orthogonal(k3, (3 * H, H)).T
    b_ih = jnp.zeros((1, 3 * H), jnp.float32)
    b_hh = jnp.zeros((1, 3 * H), jnp.float32)

    # fc2: PyTorch weight (1, H) kept as a row for the VPU reduce; bias scalar.
    w2 = orthogonal(k4, (1, H))
    b2 = jnp.zeros((1, 1), jnp.float32)

    return dict(w1=w1, b1=b1, w_ih=w_ih, b_ih=b_ih,
                w_hh=w_hh, b_hh=b_hh, w2=w2, b2=b2)


# ------------------------------- reference -------------------------------- #
def critic_rnn_ref(x_seq, h0, p):
    H = h0.shape[1]

    def step(h, x):
        a = jnp.maximum(x @ p["w1"] + p["b1"], 0.0)
        gi = a @ p["w_ih"] + p["b_ih"]
        gh = h @ p["w_hh"] + p["b_hh"]
        r = jax.nn.sigmoid(gi[:, 0:H] + gh[:, 0:H])
        z = jax.nn.sigmoid(gi[:, H:2 * H] + gh[:, H:2 * H])
        n = jnp.tanh(gi[:, 2 * H:3 * H] + r * gh[:, 2 * H:3 * H])
        h_new = (1.0 - z) * n + z * h
        v = h_new @ p["w2"].T + p["b2"]
        return h_new, v

    h_final, values = jax.lax.scan(step, h0, x_seq)
    return values, h_final


if __name__ == "__main__":
    T = 8                   # RNN timesteps (sequential forward() calls)
    B = 8                   # batch (agents * envs)
    CRITIC_INPUT_DIM = 16   # critic_input_dim
    RNN_HIDDEN_DIM = 32     # args.rnn_hidden_dim

    key = jax.random.PRNGKey(0)
    k_in, k_par = jax.random.split(key)

    x_seq = jax.random.normal(k_in, (T, B, CRITIC_INPUT_DIM), dtype=jnp.float32)
    # rnn_hidden starts as None in PyTorch -> GRUCell uses zeros.
    h0 = jnp.zeros((B, RNN_HIDDEN_DIM), jnp.float32)

    params = make_params(k_par, CRITIC_INPUT_DIM, RNN_HIDDEN_DIM)

    values, h_final = critic_rnn_forward(x_seq, h0, params)
    values = jax.block_until_ready(values)
    h_final = jax.block_until_ready(h_final)

    values_ref, h_ref = critic_rnn_ref(x_seq, h0, params)
    assert values.shape == (T, B, 1) and h_final.shape == (B, RNN_HIDDEN_DIM)
    assert jnp.allclose(values, values_ref, atol=1e-4, rtol=1e-4)
    assert jnp.allclose(h_final, h_ref, atol=1e-4, rtol=1e-4)

    print("KERNEL_OK")
</pallas_src>

<mosaic_0001>
module attributes {stable_mosaic.version = 11 : i64} {
  func.func @critic_rnn_kernel(%arg0: i32, %arg1: memref<1x8x16xf32, #tpu.memory_space<vmem>>, %arg2: memref<8x32xf32, #tpu.memory_space<vmem>>, %arg3: memref<16x32xf32, #tpu.memory_space<vmem>>, %arg4: memref<1x32xf32, #tpu.memory_space<vmem>>, %arg5: memref<32x96xf32, #tpu.memory_space<vmem>>, %arg6: memref<1x96xf32, #tpu.memory_space<vmem>>, %arg7: memref<32x96xf32, #tpu.memory_space<vmem>>, %arg8: memref<1x96xf32, #tpu.memory_space<vmem>>, %arg9: memref<1x32xf32, #tpu.memory_space<vmem>>, %arg10: memref<1x1xf32, #tpu.memory_space<smem>>, %arg11: memref<1x8x128xf32, #tpu.memory_space<vmem>>, %arg12: memref<8x32xf32, #tpu.memory_space<vmem>>) attributes {dimension_semantics = [#tpu.dimension_semantics<arbitrary>], iteration_bounds = array<i64: 8>, scalar_prefetch = 0 : i64, scratch_operands = 0 : i64, tpu.core_type = #tpu.core_type<tc>, window_params = [{transform_indices = @transform_0, window_bounds = array<i64: 1, 8, 16>}, {pipeline_mode = #tpu.pipeline_mode<synchronous>, transform_indices = @transform_1, window_bounds = array<i64: 8, 32>}, {pipeline_mode = #tpu.pipeline_mode<synchronous>, transform_indices = @transform_2, window_bounds = array<i64: 16, 32>}, {pipeline_mode = #tpu.pipeline_mode<synchronous>, transform_indices = @transform_3, window_bounds = array<i64: 1, 32>}, {pipeline_mode = #tpu.pipeline_mode<synchronous>, transform_indices = @transform_4, window_bounds = array<i64: 32, 96>}, {pipeline_mode = #tpu.pipeline_mode<synchronous>, transform_indices = @transform_5, window_bounds = array<i64: 1, 96>}, {pipeline_mode = #tpu.pipeline_mode<synchronous>, transform_indices = @transform_6, window_bounds = array<i64: 32, 96>}, {pipeline_mode = #tpu.pipeline_mode<synchronous>, transform_indices = @transform_7, window_bounds = array<i64: 1, 96>}, {pipeline_mode = #tpu.pipeline_mode<synchronous>, transform_indices = @transform_8, window_bounds = array<i64: 1, 32>}, {transform_indices = @transform_9, window_bounds = array<i64: 1, 1>}, {transform_indices = @transform_10, window_bounds = array<i64: 1, 8, 128>}, {pipeline_mode = #tpu.pipeline_mode<synchronous>, transform_indices = @transform_11, window_bounds = array<i64: 8, 32>}]} {
    %c0_i32 = arith.constant 0 : i32
    %0 = arith.cmpi eq, %arg0, %c0_i32 : i32
    %1 = arith.extui %0 : i1 to i32
    %c0_i32_0 = arith.constant 0 : i32
    %2 = arith.cmpi ne, %1, %c0_i32_0 : i32
    scf.if %2 {
      %c0_33 = arith.constant 0 : index
      %c0_34 = arith.constant 0 : index
      %63 = vector.load %arg2[%c0_33, %c0_34] : memref<8x32xf32, #tpu.memory_space<vmem>>, vector<8x32xf32>
      %c0_35 = arith.constant 0 : index
      %c0_36 = arith.constant 0 : index
      %64 = vector.load %arg12[%c0_35, %c0_36] : memref<8x32xf32, #tpu.memory_space<vmem>>, vector<8x32xf32>
      tpu.vector_store %arg12[%c0_35, %c0_36], %63 {strides = array<i32>} : memref<8x32xf32, #tpu.memory_space<vmem>>, vector<8x32xf32>,
    } else {
    }
    %c0 = arith.constant 0 : index
    %c0_1 = arith.constant 0 : index
    %c0_2 = arith.constant 0 : index
    %3 = vector.load %arg1[%c0, %c0_1, %c0_2] : memref<1x8x16xf32, #tpu.memory_space<vmem>>, vector<1x8x16xf32>
    %4 = vector.shape_cast %3 : vector<1x8x16xf32> to vector<8x16xf32>
    %c0_3 = arith.constant 0 : index
    %c0_4 = arith.constant 0 : index
    %5 = vector.load %arg12[%c0_3, %c0_4] : memref<8x32xf32, #tpu.memory_space<vmem>>, vector<8x32xf32>
    %c0_5 = arith.constant 0 : index
    %c0_6 = arith.constant 0 : index
    %6 = vector.load %arg3[%c0_5, %c0_6] : memref<16x32xf32, #tpu.memory_space<vmem>>, vector<16x32xf32>
    %cst = arith.constant dense<0.000000e+00> : vector<8x32xf32>
    %7 = tpu.matmul %4, %6, %cst {dimension_numbers = #tpu.dot_dimension_numbers<[1], [0], [0], [1], [0, 0, 1, 1], [], []>} : vector<8x16xf32>, vector<16x32xf32>, vector<8x32xf32> -> vector<8x32xf32>
    %c0_7 = arith.constant 0 : index
    %c0_8 = arith.constant 0 : index
    %8 = vector.load %arg4[%c0_7, %c0_8] : memref<1x32xf32, #tpu.memory_space<vmem>>, vector<1x32xf32>
    %9 = vector.broadcast %8 : vector<1x32xf32> to vector<8x32xf32>
    %10 = arith.addf %7, %9 : vector<8x32xf32>
    %cst_9 = arith.constant 0.000000e+00 : f32
    %11 = vector.broadcast %cst_9 : f32 to vector<8x32xf32>
    %12 = arith.maximumf %10, %11 : vector<8x32xf32>
    %c0_10 = arith.constant 0 : index
    %c0_11 = arith.constant 0 : index
    %13 = vector.load %arg5[%c0_10, %c0_11] : memref<32x96xf32, #tpu.memory_space<vmem>>, vector<32x96xf32>
    %cst_12 = arith.constant dense<0.000000e+00> : vector<8x96xf32>
    %14 = tpu.matmul %12, %13, %cst_12 {dimension_numbers = #tpu.dot_dimension_numbers<[1], [0], [0], [1], [0, 0, 1, 1], [], []>} : vector<8x32xf32>, vector<32x96xf32>, vector<8x96xf32> -> vector<8x96xf32>
    %c0_13 = arith.constant 0 : index
    %c0_14 = arith.constant 0 : index
    %15 = vector.load %arg6[%c0_13, %c0_14] : memref<1x96xf32, #tpu.memory_space<vmem>>, vector<1x96xf32>
    %16 = vector.broadcast %15 : vector<1x96xf32> to vector<8x96xf32>
    %17 = arith.addf %14, %16 : vector<8x96xf32>
    %c0_15 = arith.constant 0 : index
    %c0_16 = arith.constant 0 : index
    %18 = vector.load %arg7[%c0_15, %c0_16] : memref<32x96xf32, #tpu.memory_space<vmem>>, vector<32x96xf32>
    %cst_17 = arith.constant dense<0.000000e+00> : vector<8x96xf32>
    %19 = tpu.matmul %5, %18, %cst_17 {dimension_numbers = #tpu.dot_dimension_numbers<[1], [0], [0], [1], [0, 0, 1, 1], [], []>} : vector<8x32xf32>, vector<32x96xf32>, vector<8x96xf32> -> vector<8x96xf32>
    %c0_18 = arith.constant 0 : index
    %c0_19 = arith.constant 0 : index
    %20 = vector.load %arg8[%c0_18, %c0_19] : memref<1x96xf32, #tpu.memory_space<vmem>>, vector<1x96xf32>
    %21 = vector.broadcast %20 : vector<1x96xf32> to vector<8x96xf32>
    %22 = arith.addf %19, %21 : vector<8x96xf32>
    %23 = vector.extract_strided_slice %17 {offsets = [0, 0], sizes = [8, 32], strides = [1, 1]} : vector<8x96xf32> to vector<8x32xf32>
    %24 = vector.extract_strided_slice %22 {offsets = [0, 0], sizes = [8, 32], strides = [1, 1]} : vector<8x96xf32> to vector<8x32xf32>
    %25 = arith.addf %23, %24 : vector<8x32xf32>
    %26 = arith.negf %25 : vector<8x32xf32>
    %27 = math.exp %26 : vector<8x32xf32>
    %cst_20 = arith.constant 1.000000e+00 : f32
    %28 = vector.broadcast %cst_20 : f32 to vector<8x32xf32>
    %29 = arith.addf %28, %27 : vector<8x32xf32>
    %30 = arith.divf %28, %29 : vector<8x32xf32>
    %31 = vector.extract_strided_slice %17 {offsets = [0, 32], sizes = [8, 32], strides = [1, 1]} : vector<8x96xf32> to vector<8x32xf32>
    %32 = vector.extract_strided_slice %22 {offsets = [0, 32], sizes = [8, 32], strides = [1, 1]} : vector<8x96xf32> to vector<8x32xf32>
    %33 = arith.addf %31, %32 : vector<8x32xf32>
    %34 = arith.negf %33 : vector<8x32xf32>
    %35 = math.exp %34 : vector<8x32xf32>
    %cst_21 = arith.constant 1.000000e+00 : f32
    %36 = vector.broadcast %cst_21 : f32 to vector<8x32xf32>
    %37 = arith.addf %36, %35 : vector<8x32xf32>
    %38 = arith.divf %36, %37 : vector<8x32xf32>
    %39 = vector.extract_strided_slice %17 {offsets = [0, 64], sizes = [8, 32], strides = [1, 1]} : vector<8x96xf32> to vector<8x32xf32>
    %40 = vector.extract_strided_slice %22 {offsets = [0, 64], sizes = [8, 32], strides = [1, 1]} : vector<8x96xf32> to vector<8x32xf32>
    %41 = arith.mulf %30, %40 : vector<8x32xf32>
    %42 = arith.addf %39, %41 : vector<8x32xf32>
    %43 = math.tanh %42 : vector<8x32xf32>
    %cst_22 = arith.constant 1.000000e+00 : f32
    %44 = vector.broadcast %cst_22 : f32 to vector<8x32xf32>
    %45 = arith.subf %44, %38 : vector<8x32xf32>
    %46 = arith.mulf %45, %43 : vector<8x32xf32>
    %47 = arith.mulf %38, %5 : vector<8x32xf32>
    %48 = arith.addf %46, %47 : vector<8x32xf32>
    %c0_23 = arith.constant 0 : index
    %c0_24 = arith.constant 0 : index
    %49 = vector.load %arg9[%c0_23, %c0_24] : memref<1x32xf32, #tpu.memory_space<vmem>>, vector<1x32xf32>
    %50 = vector.broadcast %49 : vector<1x32xf32> to vector<8x32xf32>
    %51 = arith.mulf %48, %50 : vector<8x32xf32>
    %cst_25 = arith.constant dense<0.000000e+00> : vector<8xf32>
    %52 = vector.multi_reduction <add>, %51, %cst_25 [1] : vector<8x32xf32> to vector<8xf32>
    %53 = vector.shape_cast %52 : vector<8xf32> to vector<8x1xf32>
    %c0_26 = arith.constant 0 : index
    %c0_27 = arith.constant 0 : index
    %54 = memref.load %arg10[%c0_26, %c0_27] : memref<1x1xf32, #tpu.memory_space<smem>>
    %55 = vector.broadcast %54 : f32 to vector<8x1xf32>
    %56 = arith.addf %53, %55 : vector<8x1xf32>
    %57 = vector.shape_cast %56 : vector<8x1xf32> to vector<8x1xf32>
    %58 = vector.broadcast %57 : vector<8x1xf32> to vector<8x128xf32>
    %c0_28 = arith.constant 0 : index
    %c0_29 = arith.constant 0 : index
    %c0_30 = arith.constant 0 : index
    %59 = vector.load %arg11[%c0_28, %c0_29, %c0_30] : memref<1x8x128xf32, #tpu.memory_space<vmem>>, vector<1x8x128xf32>
    %60 = vector.shape_cast %59 : vector<1x8x128xf32> to vector<8x128xf32>
    %61 = vector.shape_cast %58 : vector<8x128xf32> to vector<1x8x128xf32>
    tpu.vector_store %arg11[%c0_28, %c0_29, %c0_30], %61 {strides = array<i32>} : memref<1x8x128xf32, #tpu.memory_space<vmem>>, vector<1x8x128xf32>,
    %c0_31 = arith.constant 0 : index
    %c0_32 = arith.constant 0 : index
    %62 = vector.load %arg12[%c0_31, %c0_32] : memref<8x32xf32, #tpu.memory_space<vmem>>, vector<8x32xf32>
    tpu.vector_store %arg12[%c0_31, %c0_32], %48 {strides = array<i32>} : memref<8x32xf32, #tpu.memory_space<vmem>>, vector<8x32xf32>,
    return
  }
  func.func @transform_0(%arg0: i32) -> (i32, i32, i32) {
    %c0_i32 = arith.constant 0 : i32
    %c0_i32_0 = arith.constant 0 : i32
    %c0_i32_1 = arith.constant 0 : i32
    return %arg0, %c0_i32, %c0_i32_0 : i32, i32, i32
  }
  func.func @transform_1(%arg0: i32) -> (i32, i32) {
    %c0_i32 = arith.constant 0 : i32
    %c0_i32_0 = arith.constant 0 : i32
    %c0_i32_1 = arith.constant 0 : i32
    return %c0_i32, %c0_i32_0 : i32, i32
  }
  func.func @transform_2(%arg0: i32) -> (i32, i32) {
    %c0_i32 = arith.constant 0 : i32
    %c0_i32_0 = arith.constant 0 : i32
    %c0_i32_1 = arith.constant 0 : i32
    return %c0_i32, %c0_i32_0 : i32, i32
  }
  func.func @transform_3(%arg0: i32) -> (i32, i32) {
    %c0_i32 = arith.constant 0 : i32
    %c0_i32_0 = arith.constant 0 : i32
    %c0_i32_1 = arith.constant 0 : i32
    return %c0_i32, %c0_i32_0 : i32, i32
  }
  func.func @transform_4(%arg0: i32) -> (i32, i32) {
    %c0_i32 = arith.constant 0 : i32
    %c0_i32_0 = arith.constant 0 : i32
    %c0_i32_1 = arith.constant 0 : i32
    return %c0_i32, %c0_i32_0 : i32, i32
  }
  func.func @transform_5(%arg0: i32) -> (i32, i32) {
    %c0_i32 = arith.constant 0 : i32
    %c0_i32_0 = arith.constant 0 : i32
    %c0_i32_1 = arith.constant 0 : i32
    return %c0_i32, %c0_i32_0 : i32, i32
  }
  func.func @transform_6(%arg0: i32) -> (i32, i32) {
    %c0_i32 = arith.constant 0 : i32
    %c0_i32_0 = arith.constant 0 : i32
    %c0_i32_1 = arith.constant 0 : i32
    return %c0_i32, %c0_i32_0 : i32, i32
  }
  func.func @transform_7(%arg0: i32) -> (i32, i32) {
    %c0_i32 = arith.constant 0 : i32
    %c0_i32_0 = arith.constant 0 : i32
    %c0_i32_1 = arith.constant 0 : i32
    return %c0_i32, %c0_i32_0 : i32, i32
  }
  func.func @transform_8(%arg0: i32) -> (i32, i32) {
    %c0_i32 = arith.constant 0 : i32
    %c0_i32_0 = arith.constant 0 : i32
    %c0_i32_1 = arith.constant 0 : i32
    return %c0_i32, %c0_i32_0 : i32, i32
  }
  func.func @transform_9(%arg0: i32) -> (i32, i32) {
    %c0_i32 = arith.constant 0 : i32
    %c0_i32_0 = arith.constant 0 : i32
    %c0_i32_1 = arith.constant 0 : i32
    return %c0_i32, %c0_i32_0 : i32, i32
  }
  func.func @transform_10(%arg0: i32) -> (i32, i32, i32) {
    %c0_i32 = arith.constant 0 : i32
    %c0_i32_0 = arith.constant 0 : i32
    %c0_i32_1 = arith.constant 0 : i32
    return %arg0, %c0_i32, %c0_i32_0 : i32, i32, i32
  }
  func.func @transform_11(%arg0: i32) -> (i32, i32) {
    %c0_i32 = arith.constant 0 : i32
    %c0_i32_0 = arith.constant 0 : i32
    %c0_i32_1 = arith.constant 0 : i32
    return %c0_i32, %c0_i32_0 : i32, i32
  }
}

</mosaic_0001>

<bundles_post_ra>
// kernel: tpu_custom_call.1
= control target key start
LH: loop header
LB: loop body
LE: loop exit
PB: predicated region body
PF: predicated region fallthrough
CT: control target
= control target key end

     0   :  { %s1771_s0 = inlined_call_operand.hbm [shape: f32[8,8,16], index: 0, kind: input, shape index: {}]   ;;  %s1772_s1 = inlined_call_operand.hbm [shape: f32[8,32], index: 1, kind: input, shape index: {}]   ;;  %s1773_s2 = inlined_call_operand.hbm [shape: f32[16,32], index: 2, kind: input, shape index: {}]   ;;  %s1774_s3 = inlined_call_operand.vmem [shape: f32[1,32], index: 3, kind: input, shape index: {}]   ;;  %s1775_s4 = inlined_call_operand.hbm [shape: f32[32,96], index: 4, kind: input, shape index: {}]   ;;  %s1776_s5 = inlined_call_operand.vmem [shape: f32[1,96], index: 5, kind: input, shape index: {}]   ;;  %s1777_s6 = inlined_call_operand.hbm [shape: f32[32,96], index: 6, kind: input, shape index: {}]   ;;  %s1778_s7 = inlined_call_operand.vmem [shape: f32[1,96], index: 7, kind: input, shape index: {}]   ;;  %s1779_s8 = inlined_call_operand.vmem [shape: f32[1,32], index: 8, kind: input, shape index: {}]   ;;  %s1780_s9 = inlined_call_operand.<no memory space> [shape: f32[1,1], index: 9, kind: input, shape index: {}]   ;;  %s1781_s10 = inlined_call_operand.hbm [shape: f32[8,8,128], index: 10, kind: output, shape index: {0}]   ;;  %s1782_s11 = inlined_call_operand.hbm [shape: f32[8,32], index: 11, kind: output, shape index: {1}]  }
   0x1   :  { %1787 = sst [smem:[#allocation20_spill]] %s1772_s1 }
   0x2   :  { %1788 = sst [smem:[#allocation21_spill]] %s1773_s2 }
   0x3   :  { %1789 = sst [smem:[#allocation22_spill]] %s1775_s4 }
   0x4   :  { %17 = sst [smem:[#allocation2]] %s1780_s9 }
   0x5   :  { %18 = vsyncpa [#allocation4], 0 }
   0x6   :  { %20 = vsyncpa [#allocation4 + $0x1], 0 }
   0x7   :  { %21 = vsyncpa [#allocation7], 0 }
   0x8   :  { %22 = vsyncpa [#allocation10], 0 }
   0x9   :  { %23 = vsyncpa [#allocation5], 0 }
   0xa   :  { %25 = vsyncpa [#allocation5 + $0x1], 0 }
   0xb   :  { %26 = vsyncpa [#allocation14], 0  ;;  %s1441_s19 = smov 0   ;;  %s1443_s20 = smov 0  }
   0xc   :  { %s1445_s21 = smov 0   ;;  %s1447_s22 = smov 0  }
   0xd LB: > { %s1363_s9 = smov [#allocation6]   ;;  %s1462_s24 = sadd.s32 4294967295, %s1361_s22   ;;  %s1361_s22 = sphi %s1447_s22, %s1818_s22   ;;  %s1357_s21 = sphi %s1445_s21, %s1817_s21   ;;  %s1353_s20 = sphi %s1443_s20, %s1816_s20   ;;  %s1349_s19 = sphi %s1441_s19, %s1815_s19  }
   0xe   : > { %s312_s23 = sshll.u32 %s1363_s9, 4  ;;  %p920_p0 = scmp.ge.s32.totalorder %s1361_s22, 1  ;;  %s313_s23 = int_to_ptr.vmem [resolvable:$true] %s312_s23 }
   0xf   : > { %p1783_p1 = scmp.eq.s32.totalorder %s1462_s24, 0  ;;  %p299_p2 = scmp.lt.s32.totalorder %s1361_s22, 9 }
  0x10   : > { %s1364_s26 = smov [#allocation9]   ;;  %s1365_s29 = smov [#allocation8]  }
  0x11   : > { %p1468_p4 = pnand %p920_p0, %p299_p2  ;;  %s338_s27 = sshll.u32 %s1364_s26, 4  ;;  %s1480_s27 = int_to_ptr.vmem [resolvable:$true] %s338_s27 }
  0x12   : > { %s322_s30 = sshll.u32 %s1365_s29, 4  ;;  %s1792_s1 = sld [smem:[#allocation20_spill]]  ;;  %s1482_s30 = int_to_ptr.vmem [resolvable:$true] %s322_s30 }
  0x13   : > { %s1790_s25 = scalar_select %p1468_p4, 1, 0 }
  0x14   : > { %p1031_p5 = pneg %p1468_p4 }
  0x16   : > { %p1476_p6 = pnand %p1031_p5, %p1783_p1 }
  0x18   : > { %s1115_s14 = scalar_lea.hbm %s1792_s1, 128  ;;  %p1492_p8 = pneg %p1476_p6 }
  0x19   : > { %p1116_p7 = scmp.ne.s32.totalorder %s1792_s1, %s1115_s14  ;;  %p1122_p11 = scmp.lt.u32.totalorder %s1115_s14, %s1792_s1 }
  0x1b   : > { %p1118_p9 = pnand %p1492_p8, %p1116_p7 }
  0x1d   : > { %p1119_p10 = pneg %p1118_p9 }
  0x1f   : > { %p1124_p12 = pnand %p1122_p11, %p1119_p10 }
  0x21   : > { %1127 = shalt.err (!%p1124_p12)
}
  0x22   : > { %s1128_s26 = scalar_lea.vmem %s313_s23, 128  ;;  %p1136_p5 = scmp.lt.s32.totalorder %s313_s23, %s313_s23 }
  0x23   : > { %p1129_p13 = scmp.ne.s32.totalorder %s313_s23, %s1128_s26  ;;  %p1137_p3 = scmp.lt.s32.totalorder %s1128_s26, %s1128_s26 }
  0x25   : > { %p1131_p0 = pnand %p1129_p13, %p1492_p8  ;;  %p1138_p1 = por %p1137_p3, %p1136_p5 }
  0x27   : > { %p1132_p2 = pneg %p1131_p0 }
  0x29   : > { %p1139_p4 = pnand %p1138_p1, %p1132_p2 }
  0x2b   : > { %1142 = shalt.err (!%p1139_p4)
}
  0x2c   : > { %1034 = dma.hbm_to_vmem [thread:$0]  (!%p1476_p6), %s1792_s1, 128, %s313_s23, [#allocation7]  }
  0x2d   : > { %s1794_s4 = sld [smem:[#allocation22_spill]] }
  0x33   : > { %s1143_s15 = scalar_lea.hbm %s1794_s4, 512 }
  0x34   : > { %p1144_p7 = scmp.ne.s32.totalorder %s1794_s4, %s1143_s15  ;;  %p1150_p1 = scmp.lt.u32.totalorder %s1143_s15, %s1794_s4 }
  0x36   : > { %p1146_p9 = pnand %p1144_p7, %p1492_p8 }
  0x38   : > { %p1147_p3 = pneg %p1146_p9 }
  0x3a   : > { %p1152_p4 = pnand %p1150_p1, %p1147_p3 }
  0x3c   : > { %1155 = shalt.err (!%p1152_p4)
}
  0x3d   : > { %s1156_s23 = scalar_lea.vmem %s1480_s27, 512  ;;  %p1164_p13 = scmp.lt.s32.totalorder %s1480_s27, %s1480_s27 }
  0x3e   : > { %p1157_p10 = scmp.ne.s32.totalorder %s1480_s27, %s1156_s23  ;;  %p1165_p0 = scmp.lt.s32.totalorder %s1156_s23, %s1156_s23 }
  0x40   : > { %p1159_p11 = pnand %p1157_p10, %p1492_p8  ;;  %p1166_p2 = por %p1165_p0, %p1164_p13 }
  0x42   : > { %p1160_p12 = pneg %p1159_p11 }
  0x44   : > { %p1167_p5 = pnand %p1166_p2, %p1160_p12 }
  0x46   : > { %1170 = shalt.err (!%p1167_p5)
}
  0x47   : > { %s1366_s29 = smov 128   ;;  %s1367_s12 = smov 8  }
  0x48   : > { %1040 = dma.hbm_to_vmem [thread:$0]  (!%p1476_p6), %s1794_s4, 512, %s1480_s27, [#allocation10], %s1366_s29, %s1366_s29, %s1367_s12  }
  0x49   : > { %s1795_s2 = sld [smem:[#allocation21_spill]] }
  0x4f   : > { %s1171_s18 = scalar_lea.hbm %s1795_s2, 256 }
  0x50   : > { %p1172_p7 = scmp.ne.s32.totalorder %s1795_s2, %s1171_s18  ;;  %p1178_p1 = scmp.lt.u32.totalorder %s1171_s18, %s1795_s2 }
  0x52   : > { %p1174_p9 = pnand %p1172_p7, %p1492_p8 }
  0x54   : > { %p1175_p3 = pneg %p1174_p9 }
  0x56   : > { %p1180_p4 = pnand %p1178_p1, %p1175_p3 }
  0x58   : > { %1183 = shalt.err (!%p1180_p4)
}
  0x59   : > { %s1184_s27 = scalar_lea.vmem %s1482_s30, 256  ;;  %p1192_p13 = scmp.lt.s32.totalorder %s1482_s30, %s1482_s30 }
  0x5a   : > { %p1185_p10 = scmp.ne.s32.totalorder %s1482_s30, %s1184_s27  ;;  %p1193_p0 = scmp.lt.s32.totalorder %s1184_s27, %s1184_s27 }
  0x5c   : > { %p1187_p11 = pnand %p1185_p10, %p1492_p8  ;;  %p1194_p2 = por %p1193_p0, %p1192_p13 }
  0x5e   : > { %p1188_p12 = pneg %p1187_p11 }
  0x60   : > { %p1195_p5 = pnand %p1194_p2, %p1188_p12 }
  0x62   : > { %1198 = shalt.err (!%p1195_p5)
}
  0x63   : > { %1037 = dma.hbm_to_vmem [thread:$0]  (!%p1476_p6), %s1795_s2, 256, %s1482_s30, [#allocation7], %s1366_s29, %s1366_s29, %s1367_s12  }
  0x64   : > { %s1368_s14 = smov [#allocation11]   ;;  %s1199_s9 = scalar_lea.hbm %s1777_s6, 512 }
  0x65   : > { %s354_s15 = sshll.u32 %s1368_s14, 4  ;;  %p1200_p7 = scmp.ne.s32.totalorder %s1777_s6, %s1199_s9  ;;  %s355_s15 = int_to_ptr.vmem [resolvable:$true] %s354_s15 }
  0x66   : > { %p1206_p1 = scmp.lt.u32.totalorder %s1199_s9, %s1777_s6 }
  0x67   : > { %p1202_p9 = pnand %p1200_p7, %p1492_p8 }
  0x69   : > { %p1203_p3 = pneg %p1202_p9 }
  0x6b   : > { %p1208_p4 = pnand %p1206_p1, %p1203_p3 }
  0x6d   : > { %1211 = shalt.err (!%p1208_p4)
}
  0x6e   : > { %s1212_s30 = scalar_lea.vmem %s355_s15, 512  ;;  %p1220_p13 = scmp.lt.s32.totalorder %s355_s15, %s355_s15 }
  0x6f   : > { %p1213_p10 = scmp.ne.s32.totalorder %s355_s15, %s1212_s30  ;;  %p1221_p0 = scmp.lt.s32.totalorder %s1212_s30, %s1212_s30 }
  0x71   : > { %p1215_p11 = pnand %p1213_p10, %p1492_p8  ;;  %p1222_p2 = por %p1221_p0, %p1220_p13 }
  0x73   : > { %p1216_p12 = pneg %p1215_p11 }
  0x75   : > { %p1223_p5 = pnand %p1222_p2, %p1216_p12 }
  0x77   : > { %1226 = shalt.err (!%p1223_p5)
}
  0x78   : > { %1043 = dma.hbm_to_vmem [thread:$0]  (!%p1476_p6), %s1777_s6, 512, %s355_s15, [#allocation10], %s1366_s29, %s1366_s29, %s1367_s12  }
  0x79   : > { %s919_s28 = sadd.s32 4294967294, %s1361_s22   ;;  %s1583_s17 = sadd.s32 1, %s1361_s22  }
  0x7a   : > { %s36_s13 = ssub.s32 %s1361_s22, %s1583_s17  ;;  %s39_s14 = sadd.s32 1, %s1357_s21 }
  0x7b   : > { %p37_p8 = scmp.eq.s32.totalorder %s36_s13, 0  ;;  %p46_p7 = scmp.ne.s32.totalorder %s1357_s21, %s1353_s20 }
  0x7c   : > { %p47_p9 = scmp.eq.s32.totalorder %s1361_s22, 0  ;;  %p52_p3 = scmp.ne.s32.totalorder %s1353_s20, %s1349_s19 }
  0x7d   : > { %s1594_s16 = scalar_select %p37_p8, %s1357_s21, %s39_s14  }
  0x7e   : > { %p1596_p1 = por %p47_p9, %p46_p7  ;;  %p1797_p4 = scmp.eq.s32.totalorder %s1462_s24, 0 }
  0x7f   : > { %p1785_p10 = scmp.eq.s32.totalorder %s1462_s24, 7  ;;  %p271_p11 = scmp.eq.s32.totalorder %s919_s28, 7 }
  0x80   : > { %p1602_p6 = por %p1797_p4, %p52_p3  ;;  %p1056_p12 = scmp.lt.s32.totalorder %s1361_s22, 8 }
  0x81   : > { %s377_s12 = sand.u32 1, %s1357_s21   ;;  %p1611_p13 = por %p1785_p10, %p46_p7 }
  0x82   : > { %p1615_p0 = por %p271_p11, %p52_p3  ;;  %s926_s26 = sshll.u32 %s377_s12, 3 }
  0x83   : > { %s1799_s15 = scalar_select %p1611_p13, 1, 0 }
  0x84   : > { %s1800_s9 = scalar_select %p1615_p0, 1, 0 }
  0x85   : > { %s927_s23 = sshll.u32 %s1361_s22, 7  ;;  %s381_s1 = scalar_lea.vmem [#allocation3], %s926_s26 }
  0x86   : > { %s1623_s4 = scalar_lea.hbm %s1771_s0, %s927_s23  ;;  %s388_s28 = sshll.u32 %s381_s1, 4  ;;  %s1625_s28 = int_to_ptr.vmem [resolvable:$true] %s388_s28 }
  0x87   : > { %p1629_p2 = pnand %p1056_p12, %p1596_p1  ;;  %s378_s14 = scalar_lea.sflag [#allocation4], %s377_s12 }
  0x88   : > { %s1227_s2 = scalar_lea.hbm %s1623_s4, 128  ;;  %s1232_s27 = scalar_lea.hbm %s1771_s0, 1024 }
  0x89   : > { %p1228_p5 = scmp.ne.s32.totalorder %s1623_s4, %s1227_s2  ;;  %p1229_p8 = pneg %p1629_p2 }
  0x8a   : > { %p1233_p3 = scmp.lt.u32.totalorder %s1623_s4, %s1771_s0  ;;  %p1234_p1 = scmp.lt.u32.totalorder %s1232_s27, %s1227_s2 }
  0x8b   : > { %p1230_p7 = pnand %p1229_p8, %p1228_p5  ;;  %p1236_p11 = scmp.lt.u32.totalorder %s1227_s2, %s1623_s4 }
  0x8c   : > { %p1235_p4 = por %p1234_p1, %p1233_p3 }
  0x8d   : > { %p1231_p9 = pneg %p1230_p7 }
  0x8e   : > { %p1237_p12 = por %p1236_p11, %p1235_p4 }
  0x90   : > { %p1238_p10 = pnand %p1237_p12, %p1231_p9 }
  0x92   : > { %1241 = shalt.err (!%p1238_p10)
}
  0x93   : > { %s1242_s12 = scalar_lea.vmem %s1625_s28, 128  ;;  %s1369_s1 = smov [#allocation3]  }
  0x94   : > { %p1243_p5 = scmp.ne.s32.totalorder %s1625_s28, %s1242_s12  ;;  %s1247_s26 = sshll.u32 %s1369_s1, 4  ;;  %s1248_s26 = int_to_ptr.vmem [resolvable:$false] %s1247_s26 }
  0x95   : > { %s1249_s23 = scalar_lea.vmem %s1248_s26, 256  ;;  %p1250_p13 = scmp.lt.s32.totalorder %s1625_s28, %s1248_s26 }
  0x96   : > { %p1245_p7 = pnand %p1243_p5, %p1229_p8  ;;  %p1251_p3 = scmp.lt.s32.totalorder %s1249_s23, %s1242_s12 }
  0x98   : > { %p1246_p0 = pneg %p1245_p7  ;;  %p1252_p1 = por %p1251_p3, %p1250_p13 }
  0x9a   : > { %p1253_p4 = pnand %p1252_p1, %p1246_p0 }
  0x9c   : > { %1256 = shalt.err (!%p1253_p4)
}
  0x9d   : > { %1047 = dma.hbm_to_vmem [thread:$0]  (!%p1629_p2), %s1623_s4, 128, %s1625_s28, %s378_s14  }
  0x9e   : > { %p1802_p10 = scmp.ne.s32.totalorder %s1790_s25, 0 }
  0x9f   : > { %s1661_s2 = sand.u32 (!%p1802_p10), 1, %s1353_s20  }
  0xa0   : > { %397 = sbr.rel (%p1802_p10) target bundleno = 1182 (0x49e), region = 60  ;;  %s929_s27 = sshll.u32 (!%p1802_p10), %s1661_s2, 3 }
  0xa1   : > { %s400_s18 = scalar_lea.sflag (!%p1802_p10), [#allocation4], %s1661_s2  ;;  %s403_s30 = scalar_lea.vmem (!%p1802_p10), [#allocation3], %s929_s27 }
  0xa7   : > { %1328 = dma.done.wait (%p1602_p6), %s400_s18, 128  }
  0xa8   : > { %1330 = vsyncadd (%p1602_p6), %s400_s18, 4294967168  ;;  %p1803_p13 = scmp.eq.s32.totalorder %s1462_s24, 0 }
  0xaa   : > { %1332 = dma.done.wait (%p1803_p13), [#allocation7], 384   ;;  %p1804_p0 = pmov %p1803_p13 }
  0xac   : > { %1334 = vsyncadd (%p1804_p0), [#allocation7], 4294966912  ;;  %p1805_p2 = pmov %p1804_p0 }
  0xad   : > { %p1806_p8 = pmov %p1804_p0 }
  0xae   : > { %1336 = dma.done.wait (%p1805_p2), [#allocation10], 1024  }
  0xaf   : > { %1338 = vsyncadd (%p1806_p8), [#allocation10], 4294966272  ;;  %s1677_s25 = scalar_lea.vmem [#allocation12], %s929_s27  ;;  %p1807_p9 = scmp.ne.s32.totalorder %s1462_s24, 0 }
  0xb0   : > { %v462_v0 = vld [vmem:[#allocation6] sm:$0xff] (!%p1807_p9)  ;;  %vm463_vm0 = vcmask (!%p1807_p9), 261120  }
  0xb1   : > { %461 = sbr.rel (%p1807_p9) target bundleno = 184 (0xb8), region = 84  ;;  %464 = vst.msk [vmem:[#allocation13] sm:$0xff] (!%p1807_p9), %vm463_vm0, %v462_v0 }
  0xb8 PF: > { %v467_v1 = vld [vmem:[#allocation8] sm:$0xff]  ;;  %v468_v2 = vld [vmem:[#allocation8 + $0x8] sm:$0xff]  ;;  %v1370_v3 = vmov 0.0|0.0   ;;  %vm1371_vm1 = vmmov 0   ;;  %v1372_v5 = vmov 0.0   ;;  %v636_v6 = vld [vmem:[#allocation11] sm:$0xff] }
  0xb9   : > { %992 = vmatprep.subr.bf16.mxu0 %v1370_v3  ;;  %v993_v4 = vpack.c.bf16 %v468_v2, %v467_v1  ;;  %967 = vmatprep.mubr.msk.f32.mxu0 %vm1371_vm1, %v1372_v5  ;;  %v637_v7 = vld [vmem:[#allocation11 + $0x8] sm:$0xff]  ;;  %v551_v8 = vld [vmem:[#allocation9] sm:$0xff]  ;;  %vm476_vm2 = vcmask 130048   ;;  %v638_v12 = vld [vmem:[#allocation11 + $0x10] sm:$0xff]  ;;  %vm562_vm3 = vcmask 261120   ;;  %s1373_s14 = smov 64  }
  0xba   : > { %995 = vmatprep.subr.bf16.mxu1 %v1370_v3  ;;  %978 = vmatprep.mubr.msk.f32.mxu1 %vm1371_vm1, %v1372_v5  ;;  %v465_v9 = vld [vmem:[%s403_s30] sm:$0xff]  ;;  %v1002_v10 = vpack.c.bf16 %v637_v7, %v636_v6  ;;  %v552_v11 = vld [vmem:[#allocation9 + $0x8] sm:$0xff]  ;;  %v466_v16 = vld [vmem:[#allocation13] sm:$0xff]  ;;  %s1374_s27 = smov 32   ;;  %s1375_s18 = smov 96  }
  0xbb   : > { %994 = vmatpush3.bf16.msra.mxu0 %v993_v4  ;;  %v639_v13 = vld [vmem:[#allocation11 + $0x18] sm:$0xff]  ;;  %v996_v14 = vpack.c.bf16 %v552_v11, %v551_v8  ;;  %v553_v17 = vld [vmem:[#allocation9 + $0x10] sm:$0xff]  ;;  %s1376_s30 = smov [#allocation13]   ;;  %p1808_p11 = scmp.eq.s32.totalorder %s1462_s24, 7 }
  0xbc   : > { %1001 = vmatprep.subr.bf16.mxu0 %v1370_v3  ;;  %v1005_v15 = vpack.c.bf16 %v639_v13, %v638_v12  ;;  %v554_v18 = vld [vmem:[#allocation9 + $0x18] sm:$0xff]  ;;  %s800_s29 = sshll.u32 %s1376_s30, 4  ;;  %s801_s29 = int_to_ptr.vmem [resolvable:$true] %s800_s29 }
  0xbd   : > { %997 = vmatpush3.bf16.msra.mxu1 %v996_v14  ;;  %v999_v19 = vpack.c.bf16 %v554_v18, %v553_v17  ;;  %v936_v20 = vld [vmem:[%s1774_s3] ss:$0 sm:$0xff]  ;;  %s1257_s4 = scalar_lea.vmem %s801_s29, 128  ;;  %p1264_p7 = scmp.lt.s32.totalorder %s801_s29, %s801_s29 }
  0xbe   : > { %968 = vmatmul.mubr.msk.f32.vlgmr.msra.gmra.mrb[0].mxu0 %vm476_vm2, %v465_v9  ;;  %998 = vmatprep.subr.bf16.mxu1 %v1370_v3  ;;  %v940_v25 = vld [vmem:[%s1778_s7] ss:$0 sm:$0xff]  ;;  %p1258_p6 = scmp.ne.s32.totalorder %s801_s29, %s1257_s4  ;;  %p1265_p3 = scmp.lt.s32.totalorder %s1257_s4, %s1257_s4 }
  0xbf   : > { %1003 = vmatpush3.bf16.msra.mxu0 %v1002_v10  ;;  %989 = vmatprep.mubr.msk.f32.mxu0 %vm1371_vm1, %v1372_v5  ;;  %v938_v29 = vld [vmem:[%s1776_s5] ss:$0 sm:$0xff] }
  0xc0   : > { %1004 = vmatprep.subr.bf16.mxu0 %v1370_v3  ;;  %v943_v40 = vld [vmem:[%s1779_s8] ss:$0 sm:$0xff]  ;;  %p1259_p12 = pnand %p1258_p6, %p1808_p11  ;;  %p1266_p1 = por %p1265_p3, %p1264_p7 }
  0xc1   : > { %1000 = vmatpush3.bf16.msra.mxu1 %v999_v19 }
  0xc2   : > { %p1260_p5 = pneg %p1259_p12 }
  0xc3   : > { %1006 = vmatpush3.bf16.msra.mxu0 %v1005_v15 }
  0xc4   : > { %p1267_p4 = pnand %p1266_p1, %p1260_p5 }
  0xc6   : > { %990 = vmatmul.mubr.msk.f32.vlgmr.msra.gmra.mrb[2].mxu0 %vm562_vm3, %v466_v16 }
 0x191   : > { %v546_v21 = vpop.f32.mrb[0].mxu0 }
 0x192   : > { %v547_v22 = vadd.f32 %v936_v20, %v546_v21  ;;  %v969_v23 = vpop.f32.mrb[1].mxu0 }
 0x194   : > { %v550_v24 = vmax.f32 %v547_v22, 0.0 }
 0x196   : > { %979 = vmatmul.mubr.msk.f32.vlgmr.msra.gmra.mrb[0].mxu1 %vm562_vm3, %v550_v24 }
 0x199   : > { %v716_v26 = vpop.f32.mrb[2].mxu0 }
 0x19a   : > { %v717_v27 = vadd.f32 %v940_v25, %v716_v26  ;;  %v991_v28 = vpop.f32.mrb[3].mxu0 }
 0x19c   : > { %728 = vrot.lane.b32.xlu0 %v717_v27, %s1373_s14 }
 0x20e   : > { %v729_v37 = vpop.permute.xlu0 %728 }
 0x269   : > { %v632_v30 = vpop.f32.mrb[0].mxu1 }
 0x26a   : > { %v633_v31 = vadd.f32 %v938_v29, %v632_v30  ;;  %v980_v32 = vpop.f32.mrb[1].mxu1 }
 0x26c   : > { %v720_v33 = vadd.f32 %v717_v27, %v633_v31 }
 0x26e   : > { %v942_v34 = vmul.f32 -1.442695, %v720_v33 }
 0x270   : > { %1109 = vpow2.f32 %v942_v34 }
 0x27a   : > { %v1110_v35 = vpop.eup %1109 }
 0x27b   : > { %v724_v36 = vadd.f32 1.0, %v1110_v35 }
 0x27d   : > { %1111 = vrcp.f32 %v724_v36 }
 0x287   : > { %v1112_v38 = vpop.eup %1111 }
 0x288   : > { %v731_v39 = vmul.f32 %v1112_v38, %v729_v37  ;;  %v738_v45 = vsub.f32 1.0, %v1112_v38 }
 0x28a   : > { %733 = vrot.lane.b32.xlu0 %v731_v39, %s1373_s14 }
 0x28e   : > { %755 = vrot.lane.b32.xlu0 %v943_v40, %s1374_s27 }
 0x2fc   : > { %v734_v41 = vpop.permute.xlu0 %733 }
 0x2fd   : > { %v736_v42 = vadd.f32 %v734_v41, %v633_v31 }
 0x2ff   : > { %1113 = vtanh.f32 %v736_v42 }
 0x300   : > { %v756_v49 = vpop.permute.xlu0 %755 }
 0x309   : > { %v1114_v43 = vpop.eup %1113 }
 0x30a   : > { %740 = vrot.lane.b32.xlu1 %v1114_v43, %s1375_s18 }
 0x30e   : > { %744 = vrot.lane.b32.xlu1 %v466_v16, %s1374_s27 }
 0x37c   : > { %v741_v44 = vpop.permute.xlu1 %740 }
 0x37d   : > { %v743_v47 = vmul.f32 %v741_v44, %v738_v45 }
 0x380   : > { %v745_v46 = vpop.permute.xlu1 %744 }
 0x381   : > { %v747_v48 = vmul.f32 %v1112_v38, %v745_v46 }
 0x383   : > { %v748_v50 = vadd.f32 %v747_v48, %v743_v47 }
 0x385   : > { %v758_v51 = vmul.f32 %v756_v49, %v748_v50 }
 0x387   : > { %760 = vrot.lane.b32.xlu1 %v758_v51, %s1375_s18 }
 0x38b   : > { %771 = vrot.lane.b32.xlu1 %v748_v50, %s1375_s18 }
 0x3f9   : > { %v761_v52 = vpop.permute.xlu1 %760 }
 0x3fa   : > { %v763_v53 = vsel %vm562_vm3, %v761_v52, 0.0 }
 0x3fb   : > { %764 = vadd.xlane.f32.xlu0 %v763_v53 }
 0x3fd   : > { %v772_v54 = vpop.permute.xlu1 %771 }
 0x3fe   : > { %774 = vst.msk [vmem:[#allocation13] sm:$0xff] %vm562_vm3, %v772_v54 }
 0x3ff   : > { %1270 = shalt.err (!%p1267_p4)
}
 0x400   : > { %s1271_s14 = scalar_lea.hbm %s1782_s11, 128  ;;  %p1809_p13 = pmov %p1808_p11 }
 0x401   : > { %p1272_p10 = scmp.ne.s32.totalorder %s1782_s11, %s1271_s14  ;;  %p1277_p8 = scmp.lt.u32.totalorder %s1271_s14, %s1782_s11 }
 0x403   : > { %p1273_p0 = pnand %p1272_p10, %p1809_p13 }
 0x405   : > { %p1274_p2 = pneg %p1273_p0 }
 0x407   : > { %p1279_p9 = pnand %p1277_p8, %p1274_p2 }
 0x409   : > { %1282 = shalt.err (!%p1279_p9)
}
 0x40a   : > { %p1810_p6 = pmov %p1808_p11  ;;  %s766_s30 = sld [smem:[#allocation2]] }
 0x40b   : > { %s945_s4 = sshll.u32 %s1462_s24, 7  ;;  %s789_s28 = sshll.u32 %s1677_s25, 4  ;;  %s1725_s28 = int_to_ptr.vmem [resolvable:$true] %s789_s28 }
 0x40c   : > { %1027 = dma.vmem_to_hbm [thread:$0]  (%p1810_p6), %s801_s29, 128, %s1782_s11, [#allocation14]  }
 0x40d   : > { %s1723_s12 = scalar_lea.hbm %s1781_s10, %s945_s4  ;;  %s776_s1 = scalar_lea.sflag [#allocation5], %s1661_s2 }
 0x40e   : > { %s1283_s26 = scalar_lea.vmem %s1725_s28, 128  ;;  %p1811_p12 = scmp.ne.s32.totalorder %s1799_s15, 0 }
 0x40f   : > { %p1284_p11 = scmp.ne.s32.totalorder %s1725_s28, %s1283_s26  ;;  %s1377_s29 = smov [#allocation12]  }
 0x410   : > { %v767_v55 = vstv %s766_s30  ;;  %s1287_s23 = sshll.u32 %s1377_s29, 4  ;;  %s1288_s23 = int_to_ptr.vmem [resolvable:$false] %s1287_s23 }
 0x411   : > { %p1285_p5 = pnand %p1284_p11, %p1811_p12  ;;  %s1289_s27 = scalar_lea.vmem %s1288_s23, 256 }
 0x412   : > { %p1290_p3 = scmp.lt.s32.totalorder %s1725_s28, %s1288_s23  ;;  %p1291_p1 = scmp.lt.s32.totalorder %s1289_s27, %s1283_s26 }
 0x413   : > { %p1286_p7 = pneg %p1285_p5 }
 0x414   : > { %p1292_p4 = por %p1291_p1, %p1290_p3 }
 0x416   : > { %p1293_p10 = pnand %p1292_p4, %p1286_p7 }
 0x488   : > { %v765_v56 = vpop.xlane.xlu0 %764 }
 0x489   : > { %v768_v57 = vadd.f32 %v767_v55, %v765_v56 }
 0x48b   : > { %769 = vst [vmem:[%s1677_s25] sm:$0xff] %v768_v57 }
 0x48c   : > { %1296 = shalt.err (!%p1293_p10)
}
 0x48d   : > { %s1297_s2 = scalar_lea.hbm %s1723_s12, 128  ;;  %s1301_s30 = scalar_lea.hbm %s1781_s10, 1024 }
 0x48e   : > { %p1298_p13 = scmp.ne.s32.totalorder %s1723_s12, %s1297_s2  ;;  %p1302_p8 = scmp.lt.u32.totalorder %s1723_s12, %s1781_s10 }
 0x48f   : > { %p1303_p9 = scmp.lt.u32.totalorder %s1301_s30, %s1297_s2  ;;  %p1305_p11 = scmp.lt.u32.totalorder %s1297_s2, %s1723_s12 }
 0x490   : > { %p1299_p0 = pnand %p1298_p13, %p1811_p12 }
 0x491   : > { %p1304_p6 = por %p1303_p9, %p1302_p8 }
 0x492   : > { %p1300_p2 = pneg %p1299_p0 }
 0x493   : > { %p1306_p5 = por %p1305_p11, %p1304_p6 }
 0x495   : > { %p1307_p7 = pnand %p1306_p5, %p1300_p2 }
 0x497   : > { %1310 = shalt.err (!%p1307_p7)
}
 0x498   : > { %1025 = dma.vmem_to_hbm [thread:$0]  (%p1811_p12), %s1725_s28, 128, %s1723_s12, %s776_s1  }
 0x499   : > { %p1812_p3 = scmp.eq.s32.totalorder %s1462_s24, 7 }
 0x49b   : > { %1340 = dma.done.wait (%p1812_p3), [#allocation14], 128   ;;  %p1813_p1 = pmov %p1812_p3 }
 0x49d   : > { %1342 = vsyncadd (%p1813_p1), [#allocation14], 4294967168 }
 0x49e PF: > { %p1063_p4 = scmp.ge.s32.totalorder %s1361_s22, 2  ;;  %s816_s14 = sand.u32 1, %s1349_s19  }
 0x49f   : > { %p1814_p10 = scmp.ne.s32.totalorder %s1800_s9, 0  ;;  %s817_s26 = scalar_lea.sflag [#allocation5], %s816_s14 }
 0x4a1   : > { %p1049_p13 = pnand %p1063_p4, %p1814_p10 }
 0x4a3   : > { %1344 = dma.done.wait (!%p1049_p13), %s817_s26, 128  }
 0x4a4   : > { %1346 = vsyncadd (!%p1049_p13), %s817_s26, 4294967168  ;;  %p29_p12 = scmp.ge.s32.totalorder %s1583_s17, 10   ;;  %s1815_s19 = smov %s1353_s20 }
 0x4a5   : > { %s1816_s20 = smov %s1357_s21  ;;  %s1817_s21 = smov %s1594_s16 }
 0x4a6   : > { %s1818_s22 = smov %s1583_s17  ;;  %31 = sbr.rel (!%p29_p12) target bundleno = 13 (0xd), region = 133 }
 0x4ad   :  { %822 = vsyncpa [#allocation4], 1 }
 0x4ae   :  { %824 = vsyncpa [#allocation4 + $0x1], 1 }
 0x4af   :  { %825 = vsyncpa [#allocation7], 1 }
 0x4b0   :  { %826 = vsyncpa [#allocation10], 1 }
 0x4b1   :  { %827 = vsyncpa [#allocation5], 1 }
 0x4b2   :  { %829 = vsyncpa [#allocation5 + $0x1], 1 }
 0x4b3   :  { %830 = vsyncpa [#allocation14], 1 }

</bundles_post_ra>
